<compile_context>
chip_gen: v7x
topology: tpu7x:2x2x1
jax: 0.10.0
libtpu: 0.0.40
codegen_flags: <defaults>
</compile_context>

<pallas_src>
import jax
import jax.numpy as jnp
from jax.experimental import pallas as pl
from jax.experimental.pallas import tpu as pltpu

_LANES = 128


def _make_ganloss_kernel(n_valid, bh, steps, num_parallel, needs_mask, inv_n):
    """Kernel over a (num_parallel, steps) grid of (bh, 128) row blocks."""

    def kernel(real_ref, fake_ref, out_ref, acc_gen, acc_disc):
        p = pl.program_id(0)   # "parallel" half (TensorCore split on v7x)
        i = pl.program_id(1)   # sequential reduction axis within the half

        @pl.when(i == 0)
        def _init():
            acc_gen[...] = jnp.zeros_like(acc_gen)
            acc_disc[...] = jnp.zeros_like(acc_disc)

        # Upcast per-tile; inputs stream in their native dtype (bf16-friendly).
        real = real_ref[...].astype(jnp.float32)
        fake = fake_ref[...].astype(jnp.float32)

        gen_term = (fake - 1.0) * (fake - 1.0)                   # (fake - 1)^2
        disc_term = fake * fake + (real - 1.0) * (real - 1.0)    # fake^2 + (real-1)^2

        def _accumulate(g, d):
            acc_gen[...] += jnp.sum(g, axis=0, keepdims=True)
            acc_disc[...] += jnp.sum(d, axis=0, keepdims=True)

        if needs_mask:
            # Only the globally-last block can contain out-of-range elements,
            # so the mask work stays off the steady-state (mem-bound) path.
            is_last_block = jnp.logical_and(p == num_parallel - 1, i == steps - 1)

            @pl.when(jnp.logical_not(is_last_block))
            def _full():
                _accumulate(gen_term, disc_term)

            @pl.when(is_last_block)
            def _tail():
                row0 = (p * steps + i) * bh
                row = jax.lax.broadcasted_iota(jnp.int32, (bh, _LANES), 0) + row0
                if n_valid % _LANES == 0:
                    valid = row < (n_valid // _LANES)
                else:
                    lane = jax.lax.broadcasted_iota(jnp.int32, (bh, _LANES), 1)
                    valid = row * _LANES + lane < n_valid
                _accumulate(jnp.where(valid, gen_term, 0.0),
                            jnp.where(valid, disc_term, 0.0))
        else:
            _accumulate(gen_term, disc_term)

        @pl.when(i == steps - 1)
        def _finalize():
            # Epilogue folded in: per-half per-lane partial *means* (already
            # scaled by 1/n), written as lane-dense full-width stores.
            out_ref[0, 0:1, :] = acc_gen[...] * inv_n
            out_ref[0, 1:2, :] = acc_disc[...] * inv_n

    return kernel


def _default_block_rows():
    # >= 1 MiB/input blocks reach ~85% of HBM roofline on v5e/v6e; v7x's higher
    # bandwidth (and 0.35 us/step fixed cost) wants ~2 MiB blocks.  Both fit
    # comfortably under the scoped-VMEM defaults when double-buffered.
    try:
        kind = jax.devices()[0].device_kind.lower()
    except Exception:
        return 2048
    return 4096 if "v7" in kind else 2048


def gan_loss(real_label, fake_label, *, block_rows=None):
    """Pallas GANLoss.forward: returns (loss_gen, loss_disc)."""
    assert real_label.shape == fake_label.shape, "labels must share a shape"

    if block_rows is None:
        block_rows = _default_block_rows()
    block_rows = max(16, (block_rows // 16) * 16)

    n = int(real_label.size)
    rows = pl.cdiv(n, _LANES)

    real = real_label.reshape(-1)
    fake = fake_label.reshape(-1)
    if rows * _LANES != n:
        # Only for non-lane-aligned sizes: pad by < 128 elements so the free
        # (rows, 128) reshape exists.  Padded values are masked in-kernel, so
        # their contents are irrelevant (no bias correction needed).
        pad = rows * _LANES - n
        real = jnp.pad(real, (0, pad))
        fake = jnp.pad(fake, (0, pad))
    real = real.reshape(rows, _LANES)
    fake = fake.reshape(rows, _LANES)

    # Row-block: multiple of 16 sublanes (safe for f32 and bf16 tiling).
    bh = min(block_rows, ((rows + 15) // 16) * 16)
    steps_total = pl.cdiv(rows, bh)

    # 2-way split across TensorCores (v7x megacore) when it divides evenly;
    # neutral (just a 2-D grid) on single-core v5e/v6e.
    num_parallel = 2 if (steps_total >= 2 and steps_total % 2 == 0) else 1
    steps = steps_total // num_parallel

    needs_mask = steps_total * bh * _LANES != n
    inv_n = 1.0 / float(n)

    kernel = _make_ganloss_kernel(n, bh, steps, num_parallel, needs_mask, inv_n)

    in_block = pl.BlockSpec((bh, _LANES), lambda p, i: (p * steps + i, 0))
    bytes_io = (real.size * real.dtype.itemsize
                + fake.size * fake.dtype.itemsize
                + num_parallel * 2 * _LANES * 4)

    partial = pl.pallas_call(
        kernel,
        out_shape=jax.ShapeDtypeStruct((num_parallel, 2, _LANES), jnp.float32),
        grid=(num_parallel, steps),
        in_specs=[in_block, in_block],
        out_specs=pl.BlockSpec((1, 2, _LANES), lambda p, i: (p, 0, 0)),
        scratch_shapes=[
            pltpu.VMEM((1, _LANES), jnp.float32),
            pltpu.VMEM((1, _LANES), jnp.float32),
        ],
        compiler_params=pltpu.CompilerParams(
            dimension_semantics=("parallel", "arbitrary"),
        ),
        cost_estimate=pl.CostEstimate(
            flops=7 * steps_total * bh * _LANES,
            transcendentals=0,
            bytes_accessed=bytes_io,
        ),
    )(real, fake)

    # Trivial final combine of the (at most 2) per-half partial means.
    sums = jnp.sum(partial, axis=(0, 2))   # shape (2,): [loss_gen, loss_disc]
    return sums[0], sums[1]


if __name__ == "__main__":
    key = jax.random.PRNGKey(0)
    kr, kf, kr2, kf2 = jax.random.split(key, 4)

    # --- Small discriminator-map-sized case (NCHW = 2,4,16,16), f32 --------
    shape = (2, 4, 16, 16)
    real_label = jax.random.normal(kr, shape, jnp.float32)
    fake_label = jax.random.normal(kf, shape, jnp.float32)

    loss_gen, loss_disc = gan_loss(real_label, fake_label)
    loss_gen, loss_disc = jax.block_until_ready((loss_gen, loss_disc))

    ref_disc = jnp.mean(fake_label ** 2 + (real_label - 1.0) ** 2)
    ref_gen = jnp.mean((fake_label - 1.0) ** 2)
    assert jnp.allclose(loss_gen, ref_gen, rtol=1e-5, atol=1e-6), (loss_gen, ref_gen)
    assert jnp.allclose(loss_disc, ref_disc, rtol=1e-5, atol=1e-6), (loss_disc, ref_disc)

    # --- Larger ragged bf16 case: exercises multi-step grid, in-kernel tail
    #     masking (n % 128 != 0) and the 2-way core-split path. ---------------
    shape2 = (2, 3, 499, 301)
    real2 = jax.random.normal(kr2, shape2, jnp.float32).astype(jnp.bfloat16)
    fake2 = jax.random.normal(kf2, shape2, jnp.float32).astype(jnp.bfloat16)

    lg2, ld2 = gan_loss(real2, fake2)
    lg2, ld2 = jax.block_until_ready((lg2, ld2))

    r32, f32v = real2.astype(jnp.float32), fake2.astype(jnp.float32)
    ref_d2 = jnp.mean(f32v ** 2 + (r32 - 1.0) ** 2)
    ref_g2 = jnp.mean((f32v - 1.0) ** 2)
    assert jnp.allclose(lg2, ref_g2, rtol=1e-4, atol=1e-5), (lg2, ref_g2)
    assert jnp.allclose(ld2, ref_d2, rtol=1e-4, atol=1e-5), (ld2, ref_d2)

    print("KERNEL_OK")
</pallas_src>

<mosaic_0001>
module attributes {stable_mosaic.version = 11 : i64} {
  func.func @kernel(%arg0: i32, %arg1: i32, %arg2: memref<16x128xf32, #tpu.memory_space<vmem>>, %arg3: memref<16x128xf32, #tpu.memory_space<vmem>>, %arg4: memref<1x2x128xf32, #tpu.memory_space<vmem>>, %arg5: memref<1x128xf32, #tpu.memory_space<vmem>>, %arg6: memref<1x128xf32, #tpu.memory_space<vmem>>) attributes {dimension_semantics = [#tpu.dimension_semantics<parallel>, #tpu.dimension_semantics<arbitrary>], iteration_bounds = array<i64: 1, 1>, scalar_prefetch = 0 : i64, scratch_operands = 2 : i64, tpu.core_type = #tpu.core_type<tc>, window_params = [{transform_indices = @transform_0, window_bounds = array<i64: 16, 128>}, {transform_indices = @transform_1, window_bounds = array<i64: 16, 128>}, {transform_indices = @transform_2, window_bounds = array<i64: 1, 2, 128>}]} {
    %c0_i32 = arith.constant 0 : i32
    %0 = arith.cmpi eq, %arg1, %c0_i32 : i32
    %1 = arith.extui %0 : i1 to i32
    %c0_i32_0 = arith.constant 0 : i32
    %2 = arith.cmpi ne, %1, %c0_i32_0 : i32
    scf.if %2 {
      %cst_19 = arith.constant 0.000000e+00 : f32
      %30 = vector.broadcast %cst_19 : f32 to vector<1x128xf32>
      %c0_20 = arith.constant 0 : index
      %c0_21 = arith.constant 0 : index
      %31 = vector.load %arg5[%c0_20, %c0_21] : memref<1x128xf32, #tpu.memory_space<vmem>>, vector<1x128xf32>
      tpu.vector_store %arg5[%c0_20, %c0_21], %30 {strides = array<i32>} : memref<1x128xf32, #tpu.memory_space<vmem>>, vector<1x128xf32>,
      %cst_22 = arith.constant 0.000000e+00 : f32
      %32 = vector.broadcast %cst_22 : f32 to vector<1x128xf32>
      %c0_23 = arith.constant 0 : index
      %c0_24 = arith.constant 0 : index
      %33 = vector.load %arg6[%c0_23, %c0_24] : memref<1x128xf32, #tpu.memory_space<vmem>>, vector<1x128xf32>
      tpu.vector_store %arg6[%c0_23, %c0_24], %32 {strides = array<i32>} : memref<1x128xf32, #tpu.memory_space<vmem>>, vector<1x128xf32>,
    } else {
    }
    %c0 = arith.constant 0 : index
    %c0_1 = arith.constant 0 : index
    %3 = vector.load %arg2[%c0, %c0_1] : memref<16x128xf32, #tpu.memory_space<vmem>>, vector<16x128xf32>
    %c0_2 = arith.constant 0 : index
    %c0_3 = arith.constant 0 : index
    %4 = vector.load %arg3[%c0_2, %c0_3] : memref<16x128xf32, #tpu.memory_space<vmem>>, vector<16x128xf32>
    %cst = arith.constant 1.000000e+00 : f32
    %5 = vector.broadcast %cst : f32 to vector<16x128xf32>
    %6 = arith.subf %4, %5 : vector<16x128xf32>
    %cst_4 = arith.constant 1.000000e+00 : f32
    %7 = vector.broadcast %cst_4 : f32 to vector<16x128xf32>
    %8 = arith.subf %4, %7 : vector<16x128xf32>
    %9 = arith.mulf %6, %8 : vector<16x128xf32>
    %10 = arith.mulf %4, %4 : vector<16x128xf32>
    %cst_5 = arith.constant 1.000000e+00 : f32
    %11 = vector.broadcast %cst_5 : f32 to vector<16x128xf32>
    %12 = arith.subf %3, %11 : vector<16x128xf32>
    %cst_6 = arith.constant 1.000000e+00 : f32
    %13 = vector.broadcast %cst_6 : f32 to vector<16x128xf32>
    %14 = arith.subf %3, %13 : vector<16x128xf32>
    %15 = arith.mulf %12, %14 : vector<16x128xf32>
    %16 = arith.addf %10, %15 : vector<16x128xf32>
    %c0_7 = arith.constant 0 : index
    %c0_8 = arith.constant 0 : index
    %17 = vector.load %arg5[%c0_7, %c0_8] : memref<1x128xf32, #tpu.memory_space<vmem>>, vector<1x128xf32>
    %cst_9 = arith.constant dense<0.000000e+00> : vector<128xf32>
    %18 = vector.multi_reduction <add>, %9, %cst_9 [0] : vector<16x128xf32> to vector<128xf32>
    %19 = vector.shape_cast %18 : vector<128xf32> to vector<1x128xf32>
    %20 = arith.addf %17, %19 : vector<1x128xf32>
    %c0_10 = arith.constant 0 : index
    %c0_11 = arith.constant 0 : index
    %21 = vector.load %arg5[%c0_10, %c0_11] : memref<1x128xf32, #tpu.memory_space<vmem>>, vector<1x128xf32>
    tpu.vector_store %arg5[%c0_10, %c0_11], %20 {strides = array<i32>} : memref<1x128xf32, #tpu.memory_space<vmem>>, vector<1x128xf32>,
    %c0_12 = arith.constant 0 : index
    %c0_13 = arith.constant 0 : index
    %22 = vector.load %arg6[%c0_12, %c0_13] : memref<1x128xf32, #tpu.memory_space<vmem>>, vector<1x128xf32>
    %cst_14 = arith.constant dense<0.000000e+00> : vector<128xf32>
    %23 = vector.multi_reduction <add>, %16, %cst_14 [0] : vector<16x128xf32> to vector<128xf32>
    %24 = vector.shape_cast %23 : vector<128xf32> to vector<1x128xf32>
    %25 = arith.addf %22, %24 : vector<1x128xf32>
    %c0_15 = arith.constant 0 : index
    %c0_16 = arith.constant 0 : index
    %26 = vector.load %arg6[%c0_15, %c0_16] : memref<1x128xf32, #tpu.memory_space<vmem>>, vector<1x128xf32>
    tpu.vector_store %arg6[%c0_15, %c0_16], %25 {strides = array<i32>} : memref<1x128xf32, #tpu.memory_space<vmem>>, vector<1x128xf32>,
    %c0_i32_17 = arith.constant 0 : i32
    %27 = arith.cmpi eq, %arg1, %c0_i32_17 : i32
    %28 = arith.extui %27 : i1 to i32
    %c0_i32_18 = arith.constant 0 : i32
    %29 = arith.cmpi ne, %28, %c0_i32_18 : i32
    scf.if %29 {
      %c0_19 = arith.constant 0 : index
      %c0_20 = arith.constant 0 : index
      %30 = vector.load %arg5[%c0_19, %c0_20] : memref<1x128xf32, #tpu.memory_space<vmem>>, vector<1x128xf32>
      %cst_21 = arith.constant 4.8828125E-4 : f32
      %31 = vector.broadcast %cst_21 : f32 to vector<1x128xf32>
      %32 = arith.mulf %30, %31 : vector<1x128xf32>
      %c0_22 = arith.constant 0 : index
      %c0_23 = arith.constant 0 : index
      %c0_24 = arith.constant 0 : index
      %33 = vector.load %arg4[%c0_22, %c0_23, %c0_24] : memref<1x2x128xf32, #tpu.memory_space<vmem>>, vector<1x1x128xf32>
      %34 = vector.shape_cast %33 : vector<1x1x128xf32> to vector<1x128xf32>
      %35 = vector.shape_cast %32 : vector<1x128xf32> to vector<1x1x128xf32>
      tpu.vector_store %arg4[%c0_22, %c0_23, %c0_24], %35 {strides = array<i32>} : memref<1x2x128xf32, #tpu.memory_space<vmem>>, vector<1x1x128xf32>,
      %c0_25 = arith.constant 0 : index
      %c0_26 = arith.constant 0 : index
      %36 = vector.load %arg6[%c0_25, %c0_26] : memref<1x128xf32, #tpu.memory_space<vmem>>, vector<1x128xf32>
      %cst_27 = arith.constant 4.8828125E-4 : f32
      %37 = vector.broadcast %cst_27 : f32 to vector<1x128xf32>
      %38 = arith.mulf %36, %37 : vector<1x128xf32>
      %c0_28 = arith.constant 0 : index
      %c1 = arith.constant 1 : index
      %c0_29 = arith.constant 0 : index
      %39 = vector.load %arg4[%c0_28, %c1, %c0_29] : memref<1x2x128xf32, #tpu.memory_space<vmem>>, vector<1x1x128xf32>
      %40 = vector.shape_cast %39 : vector<1x1x128xf32> to vector<1x128xf32>
      %41 = vector.shape_cast %38 : vector<1x128xf32> to vector<1x1x128xf32>
      tpu.vector_store %arg4[%c0_28, %c1, %c0_29], %41 {strides = array<i32>} : memref<1x2x128xf32, #tpu.memory_space<vmem>>, vector<1x1x128xf32>,
    } else {
    }
    return
  }
  func.func @transform_0(%arg0: i32, %arg1: i32) -> (i32, i32) {
    %c1_i32 = arith.constant 1 : i32
    %0 = arith.muli %arg0, %c1_i32 : i32
    %1 = arith.addi %0, %arg1 : i32
    %c0_i32 = arith.constant 0 : i32
    %c0_i32_0 = arith.constant 0 : i32
    return %1, %c0_i32 : i32, i32
  }
  func.func @transform_1(%arg0: i32, %arg1: i32) -> (i32, i32) {
    %c1_i32 = arith.constant 1 : i32
    %0 = arith.muli %arg0, %c1_i32 : i32
    %1 = arith.addi %0, %arg1 : i32
    %c0_i32 = arith.constant 0 : i32
    %c0_i32_0 = arith.constant 0 : i32
    return %1, %c0_i32 : i32, i32
  }
  func.func @transform_2(%arg0: i32, %arg1: i32) -> (i32, i32, i32) {
    %c0_i32 = arith.constant 0 : i32
    %c0_i32_0 = arith.constant 0 : i32
    %c0_i32_1 = arith.constant 0 : i32
    return %arg0, %c0_i32, %c0_i32_0 : i32, i32, i32
  }
}

</mosaic_0001>

<bundles_post_ra>
// kernel: tpu_custom_call.1
= control target key start
LH: loop header
LB: loop body
LE: loop exit
PB: predicated region body
PF: predicated region fallthrough
CT: control target
= control target key end

     0   :  { %7 = vsyncpa [#allocation5], 0  ;;  %s258_s0 = inlined_call_operand.hbm [shape: f32[16,128], index: 0, kind: input, shape index: {}]   ;;  %s259_s1 = inlined_call_operand.hbm [shape: f32[16,128], index: 1, kind: input, shape index: {}]   ;;  %s260_s2 = inlined_call_operand.hbm [shape: f32[1,2,128], index: 2, kind: output, shape index: {}]  }
   0x1   :  { %8 = vsyncpa [#allocation8], 0 }
   0x2   :  { %9 = vsyncpa [#allocation6], 0  ;;  %s201_s9 = smov [#allocation4]   ;;  %s129_s13 = scalar_lea.hbm %s258_s0, 256 }
   0x3   :  { %s19_s10 = sshll.u32 %s201_s9, 4  ;;  %p130_p0 = scmp.ne.s32.totalorder %s258_s0, %s129_s13  ;;  %s20_s10 = int_to_ptr.vmem [resolvable:$true] %s19_s10 }
   0x4   :  { %p133_p1 = scmp.lt.u32.totalorder %s129_s13, %s258_s0 }
   0x6   :  { %p135_p2 = pnand %p133_p1, %p130_p0 }
   0x8   :  { %138 = shalt.err (!%p135_p2)
}
   0x9   :  { %s139_s18 = scalar_lea.vmem %s20_s10, 256  ;;  %p144_p4 = scmp.lt.s32.totalorder %s20_s10, %s20_s10 }
   0xa   :  { %p140_p3 = scmp.ne.s32.totalorder %s20_s10, %s139_s18  ;;  %p145_p5 = scmp.lt.s32.totalorder %s139_s18, %s139_s18 }
   0xc   :  { %p146_p6 = por %p145_p5, %p144_p4 }
   0xe   :  { %p147_p7 = pnand %p146_p6, %p140_p3 }
  0x10   :  { %150 = shalt.err (!%p147_p7)
}
  0x11   :  { %s202_s19 = smov 128   ;;  %s203_s20 = smov 8  }
  0x12   :  { %25 = dma.hbm_to_vmem [thread:$0]  %s258_s0, 256, %s20_s10, [#allocation5], %s202_s19, %s202_s19, %s203_s20  }
  0x13   :  { %s204_s23 = smov [#allocation7]   ;;  %s151_s27 = scalar_lea.hbm %s259_s1, 256 }
  0x14   :  { %s35_s24 = sshll.u32 %s204_s23, 4  ;;  %p152_p8 = scmp.ne.s32.totalorder %s259_s1, %s151_s27  ;;  %s36_s24 = int_to_ptr.vmem [resolvable:$true] %s35_s24 }
  0x15   :  { %p155_p9 = scmp.lt.u32.totalorder %s151_s27, %s259_s1 }
  0x17   :  { %p157_p10 = pnand %p155_p9, %p152_p8 }
  0x19   :  { %160 = shalt.err (!%p157_p10)
}
  0x1a   :  { %s161_s4 = scalar_lea.vmem %s36_s24, 256  ;;  %p166_p12 = scmp.lt.s32.totalorder %s36_s24, %s36_s24 }
  0x1b   :  { %p162_p11 = scmp.ne.s32.totalorder %s36_s24, %s161_s4  ;;  %p167_p13 = scmp.lt.s32.totalorder %s161_s4, %s161_s4 }
  0x1d   :  { %p168_p0 = por %p167_p13, %p166_p12 }
  0x1f   :  { %p169_p1 = pnand %p168_p0, %p162_p11 }
  0x21   :  { %172 = shalt.err (!%p169_p1)
}
  0x22   :  { %41 = dma.hbm_to_vmem [thread:$0]  %s259_s1, 256, %s36_s24, [#allocation8], %s202_s19, %s202_s19, %s203_s20  }
  0x23   :  { %195 = dma.done.wait [#allocation5], 256  }
  0x24   :  { %196 = vsyncadd [#allocation5], 4294967040 }
  0x25   :  { %197 = dma.done.wait [#allocation8], 256  }
  0x26   :  { %198 = vsyncadd [#allocation8], 4294967040  ;;  %v205_v0 = vmov 0.0   ;;  %v60_v1 = vld [vmem:[#allocation7] sm:$0xff]  ;;  %v61_v2 = vld [vmem:[#allocation7 + $0x8] sm:$0xff]  ;;  %s206_s1 = smov [#allocation9]  }
  0x27   :  { %56 = vst [vmem:[#allocation2] sm:$0x1] %v205_v0  ;;  %57 = vst [vmem:[#allocation3] sm:$0x1] %v205_v0  ;;  %v58_v3 = vld [vmem:[#allocation4] sm:$0xff]  ;;  %v119_v4 = vadd.f32 -1.0, %v60_v1  ;;  %v66_v7 = vmul.f32 %v60_v1, %v60_v1  ;;  %v67_v8 = vmul.f32 %v61_v2, %v61_v2 }
  0x28   :  { %v120_v5 = vadd.f32 -1.0, %v61_v2  ;;  %v59_v6 = vld [vmem:[#allocation4 + $0x8] sm:$0xff]  ;;  %v121_v9 = vadd.f32 -1.0, %v58_v3  ;;  %s109_s6 = sshll.u32 %s206_s1, 4  ;;  %s110_s6 = int_to_ptr.vmem [resolvable:$true] %s109_s6 }
  0x29   :  { %v122_v10 = vadd.f32 -1.0, %v59_v6  ;;  %v64_v11 = vmul.f32 %v119_v4, %v119_v4  ;;  %s173_s7 = scalar_lea.vmem %s110_s6, 32  ;;  %p178_p3 = scmp.lt.s32.totalorder %s110_s6, %s110_s6 }
  0x2a   :  { %v65_v12 = vmul.f32 %v120_v5, %v120_v5  ;;  %v70_v13 = vmul.f32 %v121_v9, %v121_v9  ;;  %p174_p2 = scmp.ne.s32.totalorder %s110_s6, %s173_s7  ;;  %p179_p4 = scmp.lt.s32.totalorder %s173_s7, %s173_s7 }
  0x2b   :  { %v71_v14 = vmul.f32 %v122_v10, %v122_v10 }
  0x2c   :  { %v75_v15 = vadd.f32 %v65_v12, %v64_v11  ;;  %v72_v16 = vadd.f32 %v70_v13, %v66_v7  ;;  %p180_p5 = por %p179_p4, %p178_p3 }
  0x2d   :  { %v73_v17 = vadd.f32 %v71_v14, %v67_v8 }
  0x2e   :  { %v76_v18 = vrot.slane %v75_v15, 4  ;;  %v74_v27 = vld [vmem:[#allocation2] sm:$0x1]  ;;  %v84_v32 = vld [vmem:[#allocation3] sm:$0x1]  ;;  %p181_p6 = pnand %p180_p5, %p174_p2 }
  0x2f   :  { %v85_v19 = vadd.f32 %v73_v17, %v72_v16 }
  0x30   :  { %v77_v20 = vadd.f32 %v76_v18, %v75_v15 }
  0x31   :  { %v86_v21 = vrot.slane %v85_v19, 4 }
  0x32   :  { %v78_v22 = vrot.slane %v77_v20, 2 }
  0x33   :  { %v87_v23 = vadd.f32 %v86_v21, %v85_v19 }
  0x34   :  { %v79_v24 = vadd.f32 %v78_v22, %v77_v20 }
  0x35   :  { %v88_v25 = vrot.slane %v87_v23, 2 }
  0x36   :  { %v80_v26 = vrot.slane %v79_v24, 1 }
  0x37   :  { %v89_v28 = vadd.f32 %v88_v25, %v87_v23 }
  0x38   :  { %v81_v29 = vadd.f32 %v80_v26, %v79_v24 }
  0x39   :  { %v90_v30 = vrot.slane %v89_v28, 1 }
  0x3a   :  { %v82_v31 = vadd.f32 %v81_v29, %v74_v27 }
  0x3b   :  { %v91_v33 = vadd.f32 %v90_v30, %v89_v28 }
  0x3c   :  { %83 = vst [vmem:[#allocation2] sm:$0x1] %v82_v31 }
  0x3d   :  { %v92_v34 = vadd.f32 %v91_v33, %v84_v32 }
  0x3f   :  { %93 = vst [vmem:[#allocation3] sm:$0x1] %v92_v34 }
  0x43   :  { %v97_v35 = vld [vmem:[#allocation2] sm:$0x1] }
  0x44   :  { %v98_v36 = vmul.f32 0.00048828125, %v97_v35 }
  0x46   :  { %99 = vst [vmem:[#allocation9] sm:$0x1] %v98_v36  ;;  %v100_v37 = vld [vmem:[#allocation3] sm:$0x1] }
  0x47   :  { %v101_v38 = vmul.f32 0.00048828125, %v100_v37 }
  0x49   :  { %102 = vst [vmem:[#allocation9 + $0x1] sm:$0x1] %v101_v38 }
  0x4a   :  { %184 = shalt.err (!%p181_p6)
}
  0x4b   :  { %s185_s10 = scalar_lea.hbm %s260_s2, 32 }
  0x4c   :  { %p186_p7 = scmp.ne.s32.totalorder %s260_s2, %s185_s10  ;;  %p189_p8 = scmp.lt.u32.totalorder %s185_s10, %s260_s2 }
  0x4e   :  { %p191_p9 = pnand %p189_p8, %p186_p7 }
  0x50   :  { %194 = shalt.err (!%p191_p9)
}
  0x51   :  { %112 = dma.vmem_to_hbm [thread:$0]  %s110_s6, 32, %s260_s2, [#allocation6]  }
  0x52   :  { %199 = dma.done.wait [#allocation6], 32  }
  0x53   :  { %200 = vsyncadd [#allocation6], 4294967264 }
  0x54   :  { %116 = vsyncpa [#allocation5], 1 }
  0x55   :  { %117 = vsyncpa [#allocation8], 1 }
  0x56   :  { %118 = vsyncpa [#allocation6], 1 }

</bundles_post_ra>
